<compile_context>
chip_gen: v5e
topology: v5e:2x2
jax: 0.10.0
libtpu: 0.0.40
codegen_flags: <defaults>
</compile_context>

<pallas_src>
import functools

import jax
import jax.numpy as jnp
from jax import lax
from jax.experimental import pallas as pl
from jax.experimental.pallas import tpu as pltpu


def _round_up(x, m):
    return (x + m - 1) // m * m


def _largest_tile(total, cap):
    # Largest multiple of 128 that divides `total` (a multiple of 128), <= cap.
    t = min(total, max(128, cap // 128 * 128))
    while total % t:
        t -= 128
    return t


# --------------------------------------------------------------------------
# Phase 1 (fused path): conv as KH*KW shifted-window GEMMs + BN partial sums
# --------------------------------------------------------------------------
def _make_fused_conv_kernel(tap_offsets, tap_kws, width, padding, m_valid,
                            chunks, cout_p):
    # ids_ref: [2, Mp] int32    row 0: flat output index m, row 1: m % W
    # g_ref:   [Cin_p, Lp]      flattened H-padded image (compute dtype)
    # w_ref:   [T, Cout_p, Cin_p]  per-tap block-diagonal weights
    # y_ref:   [Cout_p, Mp]     conv output (lane dense)
    # ps_ref:  [Cout_p, 2]      per-image (sum, sum-of-squares), masked cols
    def kernel(ids_ref, g_ref, w_ref, y_ref, ps_ref):
        mid = ids_ref[0:1, :]
        col = ids_ref[1:2, :]
        s_tot = jnp.zeros((cout_p, 1), jnp.float32)
        ss_tot = jnp.zeros((cout_p, 1), jnp.float32)
        for c0, clen in chunks:                       # static chunking
            acc = jnp.zeros((cout_p, clen), jnp.float32)
            col_c = col[:, c0:c0 + clen]
            vm = (mid[:, c0:c0 + clen] < m_valid).astype(jnp.float32)
            for t, (off, kw) in enumerate(zip(tap_offsets, tap_kws)):
                xs = g_ref[:, c0 + off:c0 + off + clen]
                lo = padding - kw
                hi = width + padding - kw
                if lo > 0 or hi < width:
                    # columns whose horizontal tap falls into W-padding -> 0
                    mask = (col_c >= lo) & (col_c < hi)
                    xs = jnp.where(mask, xs, jnp.zeros_like(xs))
                acc = acc + jnp.dot(w_ref[t], xs,
                                    preferred_element_type=jnp.float32)
            yq = acc.astype(y_ref.dtype)
            y_ref[:, c0:c0 + clen] = yq
            yf = yq.astype(jnp.float32) * vm          # stats from stored y
            s_tot = s_tot + jnp.sum(yf, axis=1, keepdims=True)
            ss_tot = ss_tot + jnp.sum(yf * yf, axis=1, keepdims=True)
        ps_ref[:, 0:1] = s_tot
        ps_ref[:, 1:2] = ss_tot
    return kernel


# --------------------------------------------------------------------------
# Phase 1 (fallback path): per-image block-diagonal im2col GEMM + BN partials
# --------------------------------------------------------------------------
def _make_im2col_conv_kernel(m_valid):
    def kernel(ids_ref, wt_ref, at_ref, y_ref, ps_ref):
        y = jnp.dot(wt_ref[...], at_ref[...],
                    preferred_element_type=jnp.float32)
        yq = y.astype(y_ref.dtype)
        y_ref[...] = yq
        vm = (ids_ref[0:1, :] < m_valid).astype(jnp.float32)
        yf = yq.astype(jnp.float32) * vm
        ps_ref[:, 0:1] = jnp.sum(yf, axis=1, keepdims=True)
        ps_ref[:, 1:2] = jnp.sum(yf * yf, axis=1, keepdims=True)
    return kernel


# --------------------------------------------------------------------------
# Phase 2: BatchNorm normalize + PReLU, written directly in NCHW layout
# --------------------------------------------------------------------------
def _bn_prelu_kernel(alpha_ref, scale_ref, shift_ref, y_ref, o_ref):
    # alpha_ref: SMEM (1,)  shared PReLU slope
    # scale/shift: [Cout_p, 1] f32; y_ref: [Cout_p, TM]; o_ref: [Cout, TM] f32
    alpha = alpha_ref[0]
    yb = y_ref[...].astype(jnp.float32) * scale_ref[...] + shift_ref[...]
    out = jnp.where(yb >= 0.0, yb, alpha * yb)
    o_ref[...] = out[:o_ref.shape[0], :]


def _im2col_per_image(x, KH, KW, stride, padding):
    # x: [N, Cin, H, W] -> per-image patch matrix: [N, Cin*KH*KW, OH*OW]
    N, Cin, H, W = x.shape
    OH = (H + 2 * padding - KH) // stride + 1
    OW = (W + 2 * padding - KW) // stride + 1
    xp = jnp.pad(x, ((0, 0), (0, 0), (padding, padding), (padding, padding)))
    taps = jnp.stack(
        [xp[:, :, kh:kh + OH * stride:stride, kw:kw + OW * stride:stride]
         for kh in range(KH) for kw in range(KW)],
        axis=2)                                     # [N, Cin, KH*KW, OH, OW]
    return taps.reshape(N, Cin * KH * KW, OH * OW)


def convolution_forward(x, w, gamma, beta, alpha, *, stride, padding, groups,
                        eps=1e-5, chunk_m=512, tile_m=2048,
                        compute_dtype=jnp.bfloat16,
                        vmem_limit_bytes=32 * 1024 * 1024):
    """Conv2d(bias=False) + BatchNorm2d (batch stats) + PReLU (scalar alpha).

    x: [N, Cin, H, W] NCHW (like PyTorch). Returns [N, Cout, OH, OW] float32.
    """
    N, Cin, H, W = x.shape
    Cout, Cg, KH, KW = w.shape
    assert Cg == Cin // groups and Cout % groups == 0
    Og = Cout // groups
    OH = (H + 2 * padding - KH) // stride + 1
    OW = (W + 2 * padding - KW) // stride + 1
    M = OH * OW                                    # per-image output pixels
    Mp = _round_up(M, 128)                         # lane-padded
    itemsize = jnp.dtype(compute_dtype).itemsize
    cout_p = _round_up(Cout, 16 if itemsize == 2 else 8)
    y_dtype = compute_dtype                        # bf16 intermediate in prod

    # Block-diagonal weights [Cout, Cin, KH, KW] (zero across groups).
    # TODO(synk): for groups >> 4 / depthwise, put the group on a grid axis
    # instead -- the block-diagonal form wastes O(groups) MXU depth & bytes.
    wg = w.reshape(groups, Og, Cg, KH, KW)
    w_bd = jnp.einsum('gockl,gh->gohckl', wg, jnp.eye(groups, dtype=w.dtype))
    w_bd = w_bd.reshape(Cout, Cin, KH, KW)

    # Row 0: flat output index m (for the BN valid-column mask);
    # row 1: output column m % W (for the fused path's horizontal-pad masks).
    m_ids = jnp.arange(Mp, dtype=jnp.int32)
    ids = jnp.stack([m_ids, m_ids % jnp.int32(W)], axis=0)

    cparams = pltpu.CompilerParams(
        dimension_semantics=("parallel",),         # v7x: one image per core
        vmem_limit_bytes=vmem_limit_bytes)

    fused = (stride == 1) and (OW == W)            # "same"-style convolution
    if fused:
        # ---- fused phase 1: no im2col in HBM ------------------------------
        cin_p = _round_up(Cin, 8)
        Hp = H + 2 * padding
        Lp = _round_up(max(Mp + (KH - 1) * W + KW - 1, padding + Hp * W), 128)
        xh = jnp.pad(x, ((0, 0), (0, cin_p - Cin),
                         (padding, padding), (0, 0)))       # pad C and H only
        g = xh.reshape(N, cin_p, Hp * W)
        g = jnp.pad(g, ((0, 0), (0, 0), (padding, Lp - padding - Hp * W)))
        g = g.astype(compute_dtype)

        taps = [(kh, kw) for kh in range(KH) for kw in range(KW)]
        tap_offsets = [kh * W + kw for kh, kw in taps]
        tap_kws = [kw for _, kw in taps]
        w_taps = jnp.transpose(w_bd, (2, 3, 0, 1)).reshape(KH * KW, Cout, Cin)
        w_taps = jnp.pad(w_taps, ((0, 0), (0, cout_p - Cout),
                                  (0, cin_p - Cin))).astype(compute_dtype)

        cm = max(128, min(_round_up(chunk_m, 128), Mp))      # static chunks
        chunks = [(c0, min(cm, Mp - c0)) for c0 in range(0, Mp, cm)]

        vmem_est = 2 * (ids.size * 4 + cin_p * Lp * itemsize
                        + w_taps.size * itemsize
                        + cout_p * Mp * jnp.dtype(y_dtype).itemsize
                        + cout_p * 2 * 4)
        assert vmem_est < vmem_limit_bytes, (vmem_est, vmem_limit_bytes)

        kernel = _make_fused_conv_kernel(tap_offsets, tap_kws, W, padding, M,
                                         chunks, cout_p)
        y_flat, psums = pl.pallas_call(
            kernel,
            out_shape=(jax.ShapeDtypeStruct((N, cout_p, Mp), y_dtype),
                       jax.ShapeDtypeStruct((N, cout_p, 2), jnp.float32)),
            grid_spec=pltpu.PrefetchScalarGridSpec(
                num_scalar_prefetch=0,
                grid=(N,),
                in_specs=[
                    pl.BlockSpec((2, Mp), lambda n: (0, 0)),
                    pl.BlockSpec((None, cin_p, Lp), lambda n: (n, 0, 0)),
                    pl.BlockSpec((KH * KW, cout_p, cin_p),
                                 lambda n: (0, 0, 0)),
                ],
                out_specs=[
                    pl.BlockSpec((None, cout_p, Mp), lambda n: (n, 0, 0)),
                    pl.BlockSpec((None, cout_p, 2), lambda n: (n, 0, 0)),
                ],
            ),
            compiler_params=cparams,
        )(ids, g, w_taps)
    else:
        # ---- fallback phase 1: per-image block-diagonal im2col GEMM --------
        # TODO(synk): fusing patch extraction for stride > 1 / "valid" convs
        # needs a halo'd manual-DMA spatial pipeline; XLA im2col kept here.
        Kd = Cin * KH * KW
        Kp = _round_up(Kd, 16 if itemsize == 2 else 8)
        at = _im2col_per_image(x, KH, KW, stride, padding)    # [N, Kd, M]
        at = jnp.pad(at, ((0, 0), (0, Kp - Kd),
                          (0, Mp - M))).astype(compute_dtype)
        wt = jnp.pad(w_bd.reshape(Cout, Kd),
                     ((0, cout_p - Cout), (0, Kp - Kd))).astype(compute_dtype)

        vmem_est = 2 * (ids.size * 4 + Kp * Mp * itemsize + wt.size * itemsize
                        + cout_p * Mp * jnp.dtype(y_dtype).itemsize
                        + cout_p * 2 * 4)
        assert vmem_est < vmem_limit_bytes, (vmem_est, vmem_limit_bytes)

        y_flat, psums = pl.pallas_call(
            _make_im2col_conv_kernel(M),
            out_shape=(jax.ShapeDtypeStruct((N, cout_p, Mp), y_dtype),
                       jax.ShapeDtypeStruct((N, cout_p, 2), jnp.float32)),
            grid_spec=pltpu.PrefetchScalarGridSpec(
                num_scalar_prefetch=0,
                grid=(N,),
                in_specs=[
                    pl.BlockSpec((2, Mp), lambda n: (0, 0)),
                    pl.BlockSpec((cout_p, Kp), lambda n: (0, 0)),
                    pl.BlockSpec((None, Kp, Mp), lambda n: (n, 0, 0)),
                ],
                out_specs=[
                    pl.BlockSpec((None, cout_p, Mp), lambda n: (n, 0, 0)),
                    pl.BlockSpec((None, cout_p, 2), lambda n: (n, 0, 0)),
                ],
            ),
            compiler_params=cparams,
        )(ids, wt, at)

    # ---- fold BN statistics into per-channel scale/shift (tiny, O(C)) ------
    # Single-pass E[y^2]-E[y]^2 in f32: assumes O(1)-scale activations.
    s = jnp.sum(psums, axis=0)                               # [cout_p, 2]
    cnt = jnp.float32(N * M)
    mean = s[:, 0] / cnt
    var = jnp.maximum(s[:, 1] / cnt - mean * mean, 0.0)      # biased (training)
    inv_std = lax.rsqrt(var + eps)
    gamma_p = jnp.pad(gamma.astype(jnp.float32), (0, cout_p - Cout))
    beta_p = jnp.pad(beta.astype(jnp.float32), (0, cout_p - Cout))
    scale = (gamma_p * inv_std).reshape(cout_p, 1)
    shift = (beta_p - mean * gamma_p * inv_std).reshape(cout_p, 1)
    alpha_s = jnp.asarray(alpha, jnp.float32).reshape(1)

    # ---- phase 2: normalize + PReLU, output directly in NCHW layout --------
    tile2 = _largest_tile(Mp, tile_m)
    out_flat = pl.pallas_call(
        _bn_prelu_kernel,
        out_shape=jax.ShapeDtypeStruct((N, Cout, Mp), jnp.float32),
        grid_spec=pltpu.PrefetchScalarGridSpec(
            num_scalar_prefetch=0,
            grid=(N, Mp // tile2),
            in_specs=[
                pl.BlockSpec(memory_space=pltpu.MemorySpace.SMEM),    # alpha
                pl.BlockSpec((cout_p, 1), lambda n, j: (0, 0)),       # scale
                pl.BlockSpec((cout_p, 1), lambda n, j: (0, 0)),       # shift
                pl.BlockSpec((None, cout_p, tile2), lambda n, j: (n, 0, j)),
            ],
            out_specs=pl.BlockSpec((None, Cout, tile2),
                                   lambda n, j: (n, 0, j)),
        ),
        compiler_params=pltpu.CompilerParams(
            dimension_semantics=("parallel", "parallel"),
            vmem_limit_bytes=vmem_limit_bytes),
    )(alpha_s, scale, shift, y_flat)

    # [N, Cout, Mp] -> [N, Cout, OH, OW]; when Mp == M (the "same" case this
    # kernel targets) this is a pure metadata reshape -- no extra HBM pass.
    return out_flat[..., :M].reshape(N, Cout, OH, OW)


def reference_forward(x, w, gamma, beta, alpha, *, stride, padding, groups,
                      eps=1e-5):
    # Pure-JAX reference (conv + training-mode BN + PReLU) for validation.
    y = lax.conv_general_dilated(
        x, w, window_strides=(stride, stride),
        padding=((padding, padding), (padding, padding)),
        dimension_numbers=("NCHW", "OIHW", "NCHW"),
        feature_group_count=groups)
    mean = jnp.mean(y, axis=(0, 2, 3), keepdims=True)
    var = jnp.mean((y - mean) ** 2, axis=(0, 2, 3), keepdims=True)
    y_bn = (y - mean) * lax.rsqrt(var + eps)
    y_bn = y_bn * gamma.reshape(1, -1, 1, 1) + beta.reshape(1, -1, 1, 1)
    a = alpha.reshape(1, 1, 1, 1)
    return jnp.where(y_bn >= 0, y_bn, a * y_bn)


if __name__ == "__main__":
    # Module hyper-params (small, consistent with the PyTorch module signature)
    in_channels, out_channels = 4, 8
    kernel_size, stride, padding, groups = 3, 1, 1, 2

    key = jax.random.PRNGKey(0)
    kx, kw_key = jax.random.split(key)

    # Input: NCHW, like PyTorch.
    x = jax.random.normal(kx, (2, in_channels, 16, 16), dtype=jnp.float32)

    # Deterministic parameter init mirroring PyTorch defaults:
    #  - Conv2d weight: U(-1/sqrt(fan_in), 1/sqrt(fan_in))
    #  - BatchNorm2d: weight=1, bias=0 (running stats unused in training mode)
    #  - PReLU: single alpha = 0.25
    cg = in_channels // groups
    fan_in = cg * kernel_size * kernel_size
    bound = 1.0 / (fan_in ** 0.5)
    w = jax.random.uniform(
        kw_key, (out_channels, cg, kernel_size, kernel_size),
        minval=-bound, maxval=bound, dtype=jnp.float32)
    gamma = jnp.ones((out_channels,), jnp.float32)
    beta = jnp.zeros((out_channels,), jnp.float32)
    alpha = jnp.array([0.25], jnp.float32)

    ref = reference_forward(x, w, gamma, beta, alpha,
                            stride=stride, padding=padding, groups=groups)

    # Fused tap-shift path, f32 GEMM: tight structural/numerical check.
    fwd_f32 = jax.jit(functools.partial(
        convolution_forward, stride=stride, padding=padding, groups=groups,
        compute_dtype=jnp.float32))
    out_f32 = jax.block_until_ready(fwd_f32(x, w, gamma, beta, alpha))
    assert out_f32.shape == ref.shape == (2, out_channels, 16, 16)
    assert jnp.allclose(out_f32, ref, atol=2e-3, rtol=2e-3)

    # Fused path, bf16 GEMM + bf16 intermediate (production path).
    fwd_bf16 = jax.jit(functools.partial(
        convolution_forward, stride=stride, padding=padding, groups=groups,
        compute_dtype=jnp.bfloat16))
    out_bf16 = jax.block_until_ready(fwd_bf16(x, w, gamma, beta, alpha))
    assert out_bf16.shape == ref.shape
    assert jnp.allclose(out_bf16, ref, atol=4e-2, rtol=4e-2)

    # Strided config exercises the im2col fallback path (f32).
    ref_s2 = reference_forward(x, w, gamma, beta, alpha,
                               stride=2, padding=padding, groups=groups)
    fwd_s2 = jax.jit(functools.partial(
        convolution_forward, stride=2, padding=padding, groups=groups,
        compute_dtype=jnp.float32))
    out_s2 = jax.block_until_ready(fwd_s2(x, w, gamma, beta, alpha))
    assert out_s2.shape == ref_s2.shape == (2, out_channels, 8, 8)
    assert jnp.allclose(out_s2, ref_s2, atol=2e-3, rtol=2e-3)

    print("KERNEL_OK")
</pallas_src>

<mosaic_0001>
module attributes {stable_mosaic.version = 11 : i64} {
  func.func @kernel(%arg0: i32, %arg1: memref<2x256xi32, #tpu.memory_space<vmem>>, %arg2: memref<1x8x384xf32, #tpu.memory_space<vmem>>, %arg3: memref<9x8x8xf32, #tpu.memory_space<vmem>>, %arg4: memref<1x8x256xf32, #tpu.memory_space<vmem>>, %arg5: memref<1x8x2xf32, #tpu.memory_space<vmem>>) attributes {dimension_semantics = [#tpu.dimension_semantics<parallel>], iteration_bounds = array<i64: 2>, scalar_prefetch = 0 : i64, scratch_operands = 0 : i64, tpu.core_type = #tpu.core_type<tc>, window_params = [{pipeline_mode = #tpu.pipeline_mode<synchronous>, transform_indices = @transform_0, window_bounds = array<i64: 2, 256>}, {transform_indices = @transform_1, window_bounds = array<i64: 1, 8, 384>}, {pipeline_mode = #tpu.pipeline_mode<synchronous>, transform_indices = @transform_2, window_bounds = array<i64: 9, 8, 8>}, {transform_indices = @transform_3, window_bounds = array<i64: 1, 8, 256>}, {transform_indices = @transform_4, window_bounds = array<i64: 1, 8, 2>}]} {
    %c0 = arith.constant 0 : index
    %c0_0 = arith.constant 0 : index
    %0 = vector.load %arg1[%c0, %c0_0] : memref<2x256xi32, #tpu.memory_space<vmem>>, vector<1x256xi32>
    %c1 = arith.constant 1 : index
    %c0_1 = arith.constant 0 : index
    %1 = vector.load %arg1[%c1, %c0_1] : memref<2x256xi32, #tpu.memory_space<vmem>>, vector<1x256xi32>
    %cst = arith.constant 0.000000e+00 : f32
    %2 = vector.broadcast %cst : f32 to vector<8x1xf32>
    %cst_2 = arith.constant 0.000000e+00 : f32
    %3 = vector.broadcast %cst_2 : f32 to vector<8x1xf32>
    %cst_3 = arith.constant 0.000000e+00 : f32
    %4 = vector.broadcast %cst_3 : f32 to vector<8x256xf32>
    %c256_i32 = arith.constant 256 : i32
    %5 = vector.broadcast %c256_i32 : i32 to vector<1x256xi32>
    %6 = arith.cmpi slt, %0, %5 : vector<1x256xi32>
    %7 = arith.extui %6 : vector<1x256xi1> to vector<1x256xi32>
    %8 = arith.sitofp %7 : vector<1x256xi32> to vector<1x256xf32>
    %c0_4 = arith.constant 0 : index
    %c0_5 = arith.constant 0 : index
    %c0_6 = arith.constant 0 : index
    %9 = vector.load %arg2[%c0_4, %c0_5, %c0_6] : memref<1x8x384xf32, #tpu.memory_space<vmem>>, vector<1x8x256xf32>
    %10 = vector.shape_cast %9 : vector<1x8x256xf32> to vector<8x256xf32>
    %c1_i32 = arith.constant 1 : i32
    %11 = vector.broadcast %c1_i32 : i32 to vector<1x256xi32>
    %12 = arith.cmpi sge, %1, %11 : vector<1x256xi32>
    %c17_i32 = arith.constant 17 : i32
    %13 = vector.broadcast %c17_i32 : i32 to vector<1x256xi32>
    %14 = arith.cmpi slt, %1, %13 : vector<1x256xi32>
    %15 = arith.andi %12, %14 : vector<1x256xi1>
    %cst_7 = arith.constant 0.000000e+00 : f32
    %16 = vector.broadcast %cst_7 : f32 to vector<8x256xf32>
    %17 = vector.shape_cast %15 : vector<1x256xi1> to vector<1x256xi1>
    %18 = vector.broadcast %17 : vector<1x256xi1> to vector<8x256xi1>
    %19 = arith.select %18, %10, %16 : vector<8x256xi1>, vector<8x256xf32>
    %c0_8 = arith.constant 0 : index
    %c0_9 = arith.constant 0 : index
    %c0_10 = arith.constant 0 : index
    %20 = vector.load %arg3[%c0_8, %c0_9, %c0_10] : memref<9x8x8xf32, #tpu.memory_space<vmem>>, vector<1x8x8xf32>
    %21 = vector.shape_cast %20 : vector<1x8x8xf32> to vector<8x8xf32>
    %cst_11 = arith.constant dense<0.000000e+00> : vector<8x256xf32>
    %22 = tpu.matmul %21, %19, %cst_11 {dimension_numbers = #tpu.dot_dimension_numbers<[1], [0], [0], [1], [0, 0, 1, 1], [], []>} : vector<8x8xf32>, vector<8x256xf32>, vector<8x256xf32> -> vector<8x256xf32>
    %23 = arith.addf %4, %22 : vector<8x256xf32>
    %c0_12 = arith.constant 0 : index
    %c0_13 = arith.constant 0 : index
    %c1_14 = arith.constant 1 : index
    %24 = vector.load %arg2[%c0_12, %c0_13, %c1_14] : memref<1x8x384xf32, #tpu.memory_space<vmem>>, vector<1x8x256xf32>
    %25 = vector.shape_cast %24 : vector<1x8x256xf32> to vector<8x256xf32>
    %c1_15 = arith.constant 1 : index
    %c0_16 = arith.constant 0 : index
    %c0_17 = arith.constant 0 : index
    %26 = vector.load %arg3[%c1_15, %c0_16, %c0_17] : memref<9x8x8xf32, #tpu.memory_space<vmem>>, vector<1x8x8xf32>
    %27 = vector.shape_cast %26 : vector<1x8x8xf32> to vector<8x8xf32>
    %cst_18 = arith.constant dense<0.000000e+00> : vector<8x256xf32>
    %28 = tpu.matmul %27, %25, %cst_18 {dimension_numbers = #tpu.dot_dimension_numbers<[1], [0], [0], [1], [0, 0, 1, 1], [], []>} : vector<8x8xf32>, vector<8x256xf32>, vector<8x256xf32> -> vector<8x256xf32>
    %29 = arith.addf %23, %28 : vector<8x256xf32>
    %c0_19 = arith.constant 0 : index
    %c0_20 = arith.constant 0 : index
    %c2 = arith.constant 2 : index
    %30 = vector.load %arg2[%c0_19, %c0_20, %c2] : memref<1x8x384xf32, #tpu.memory_space<vmem>>, vector<1x8x256xf32>
    %31 = vector.shape_cast %30 : vector<1x8x256xf32> to vector<8x256xf32>
    %c-1_i32 = arith.constant -1 : i32
    %32 = vector.broadcast %c-1_i32 : i32 to vector<1x256xi32>
    %33 = arith.cmpi sge, %1, %32 : vector<1x256xi32>
    %c15_i32 = arith.constant 15 : i32
    %34 = vector.broadcast %c15_i32 : i32 to vector<1x256xi32>
    %35 = arith.cmpi slt, %1, %34 : vector<1x256xi32>
    %36 = arith.andi %33, %35 : vector<1x256xi1>
    %cst_21 = arith.constant 0.000000e+00 : f32
    %37 = vector.broadcast %cst_21 : f32 to vector<8x256xf32>
    %38 = vector.shape_cast %36 : vector<1x256xi1> to vector<1x256xi1>
    %39 = vector.broadcast %38 : vector<1x256xi1> to vector<8x256xi1>
    %40 = arith.select %39, %31, %37 : vector<8x256xi1>, vector<8x256xf32>
    %c2_22 = arith.constant 2 : index
    %c0_23 = arith.constant 0 : index
    %c0_24 = arith.constant 0 : index
    %41 = vector.load %arg3[%c2_22, %c0_23, %c0_24] : memref<9x8x8xf32, #tpu.memory_space<vmem>>, vector<1x8x8xf32>
    %42 = vector.shape_cast %41 : vector<1x8x8xf32> to vector<8x8xf32>
    %cst_25 = arith.constant dense<0.000000e+00> : vector<8x256xf32>
    %43 = tpu.matmul %42, %40, %cst_25 {dimension_numbers = #tpu.dot_dimension_numbers<[1], [0], [0], [1], [0, 0, 1, 1], [], []>} : vector<8x8xf32>, vector<8x256xf32>, vector<8x256xf32> -> vector<8x256xf32>
    %44 = arith.addf %29, %43 : vector<8x256xf32>
    %c0_26 = arith.constant 0 : index
    %c0_27 = arith.constant 0 : index
    %c16 = arith.constant 16 : index
    %45 = vector.load %arg2[%c0_26, %c0_27, %c16] : memref<1x8x384xf32, #tpu.memory_space<vmem>>, vector<1x8x256xf32>
    %46 = vector.shape_cast %45 : vector<1x8x256xf32> to vector<8x256xf32>
    %c1_i32_28 = arith.constant 1 : i32
    %47 = vector.broadcast %c1_i32_28 : i32 to vector<1x256xi32>
    %48 = arith.cmpi sge, %1, %47 : vector<1x256xi32>
    %c17_i32_29 = arith.constant 17 : i32
    %49 = vector.broadcast %c17_i32_29 : i32 to vector<1x256xi32>
    %50 = arith.cmpi slt, %1, %49 : vector<1x256xi32>
    %51 = arith.andi %48, %50 : vector<1x256xi1>
    %cst_30 = arith.constant 0.000000e+00 : f32
    %52 = vector.broadcast %cst_30 : f32 to vector<8x256xf32>
    %53 = vector.shape_cast %51 : vector<1x256xi1> to vector<1x256xi1>
    %54 = vector.broadcast %53 : vector<1x256xi1> to vector<8x256xi1>
    %55 = arith.select %54, %46, %52 : vector<8x256xi1>, vector<8x256xf32>
    %c3 = arith.constant 3 : index
    %c0_31 = arith.constant 0 : index
    %c0_32 = arith.constant 0 : index
    %56 = vector.load %arg3[%c3, %c0_31, %c0_32] : memref<9x8x8xf32, #tpu.memory_space<vmem>>, vector<1x8x8xf32>
    %57 = vector.shape_cast %56 : vector<1x8x8xf32> to vector<8x8xf32>
    %cst_33 = arith.constant dense<0.000000e+00> : vector<8x256xf32>
    %58 = tpu.matmul %57, %55, %cst_33 {dimension_numbers = #tpu.dot_dimension_numbers<[1], [0], [0], [1], [0, 0, 1, 1], [], []>} : vector<8x8xf32>, vector<8x256xf32>, vector<8x256xf32> -> vector<8x256xf32>
    %59 = arith.addf %44, %58 : vector<8x256xf32>
    %c0_34 = arith.constant 0 : index
    %c0_35 = arith.constant 0 : index
    %c17 = arith.constant 17 : index
    %60 = vector.load %arg2[%c0_34, %c0_35, %c17] : memref<1x8x384xf32, #tpu.memory_space<vmem>>, vector<1x8x256xf32>
    %61 = vector.shape_cast %60 : vector<1x8x256xf32> to vector<8x256xf32>
    %c4 = arith.constant 4 : index
    %c0_36 = arith.constant 0 : index
    %c0_37 = arith.constant 0 : index
    %62 = vector.load %arg3[%c4, %c0_36, %c0_37] : memref<9x8x8xf32, #tpu.memory_space<vmem>>, vector<1x8x8xf32>
    %63 = vector.shape_cast %62 : vector<1x8x8xf32> to vector<8x8xf32>
    %cst_38 = arith.constant dense<0.000000e+00> : vector<8x256xf32>
    %64 = tpu.matmul %63, %61, %cst_38 {dimension_numbers = #tpu.dot_dimension_numbers<[1], [0], [0], [1], [0, 0, 1, 1], [], []>} : vector<8x8xf32>, vector<8x256xf32>, vector<8x256xf32> -> vector<8x256xf32>
    %65 = arith.addf %59, %64 : vector<8x256xf32>
    %c0_39 = arith.constant 0 : index
    %c0_40 = arith.constant 0 : index
    %c18 = arith.constant 18 : index
    %66 = vector.load %arg2[%c0_39, %c0_40, %c18] : memref<1x8x384xf32, #tpu.memory_space<vmem>>, vector<1x8x256xf32>
    %67 = vector.shape_cast %66 : vector<1x8x256xf32> to vector<8x256xf32>
    %c-1_i32_41 = arith.constant -1 : i32
    %68 = vector.broadcast %c-1_i32_41 : i32 to vector<1x256xi32>
    %69 = arith.cmpi sge, %1, %68 : vector<1x256xi32>
    %c15_i32_42 = arith.constant 15 : i32
    %70 = vector.broadcast %c15_i32_42 : i32 to vector<1x256xi32>
    %71 = arith.cmpi slt, %1, %70 : vector<1x256xi32>
    %72 = arith.andi %69, %71 : vector<1x256xi1>
    %cst_43 = arith.constant 0.000000e+00 : f32
    %73 = vector.broadcast %cst_43 : f32 to vector<8x256xf32>
    %74 = vector.shape_cast %72 : vector<1x256xi1> to vector<1x256xi1>
    %75 = vector.broadcast %74 : vector<1x256xi1> to vector<8x256xi1>
    %76 = arith.select %75, %67, %73 : vector<8x256xi1>, vector<8x256xf32>
    %c5 = arith.constant 5 : index
    %c0_44 = arith.constant 0 : index
    %c0_45 = arith.constant 0 : index
    %77 = vector.load %arg3[%c5, %c0_44, %c0_45] : memref<9x8x8xf32, #tpu.memory_space<vmem>>, vector<1x8x8xf32>
    %78 = vector.shape_cast %77 : vector<1x8x8xf32> to vector<8x8xf32>
    %cst_46 = arith.constant dense<0.000000e+00> : vector<8x256xf32>
    %79 = tpu.matmul %78, %76, %cst_46 {dimension_numbers = #tpu.dot_dimension_numbers<[1], [0], [0], [1], [0, 0, 1, 1], [], []>} : vector<8x8xf32>, vector<8x256xf32>, vector<8x256xf32> -> vector<8x256xf32>
    %80 = arith.addf %65, %79 : vector<8x256xf32>
    %c0_47 = arith.constant 0 : index
    %c0_48 = arith.constant 0 : index
    %c32 = arith.constant 32 : index
    %81 = vector.load %arg2[%c0_47, %c0_48, %c32] : memref<1x8x384xf32, #tpu.memory_space<vmem>>, vector<1x8x256xf32>
    %82 = vector.shape_cast %81 : vector<1x8x256xf32> to vector<8x256xf32>
    %c1_i32_49 = arith.constant 1 : i32
    %83 = vector.broadcast %c1_i32_49 : i32 to vector<1x256xi32>
    %84 = arith.cmpi sge, %1, %83 : vector<1x256xi32>
    %c17_i32_50 = arith.constant 17 : i32
    %85 = vector.broadcast %c17_i32_50 : i32 to vector<1x256xi32>
    %86 = arith.cmpi slt, %1, %85 : vector<1x256xi32>
    %87 = arith.andi %84, %86 : vector<1x256xi1>
    %cst_51 = arith.constant 0.000000e+00 : f32
    %88 = vector.broadcast %cst_51 : f32 to vector<8x256xf32>
    %89 = vector.shape_cast %87 : vector<1x256xi1> to vector<1x256xi1>
    %90 = vector.broadcast %89 : vector<1x256xi1> to vector<8x256xi1>
    %91 = arith.select %90, %82, %88 : vector<8x256xi1>, vector<8x256xf32>
    %c6 = arith.constant 6 : index
    %c0_52 = arith.constant 0 : index
    %c0_53 = arith.constant 0 : index
    %92 = vector.load %arg3[%c6, %c0_52, %c0_53] : memref<9x8x8xf32, #tpu.memory_space<vmem>>, vector<1x8x8xf32>
    %93 = vector.shape_cast %92 : vector<1x8x8xf32> to vector<8x8xf32>
    %cst_54 = arith.constant dense<0.000000e+00> : vector<8x256xf32>
    %94 = tpu.matmul %93, %91, %cst_54 {dimension_numbers = #tpu.dot_dimension_numbers<[1], [0], [0], [1], [0, 0, 1, 1], [], []>} : vector<8x8xf32>, vector<8x256xf32>, vector<8x256xf32> -> vector<8x256xf32>
    %95 = arith.addf %80, %94 : vector<8x256xf32>
    %c0_55 = arith.constant 0 : index
    %c0_56 = arith.constant 0 : index
    %c33 = arith.constant 33 : index
    %96 = vector.load %arg2[%c0_55, %c0_56, %c33] : memref<1x8x384xf32, #tpu.memory_space<vmem>>, vector<1x8x256xf32>
    %97 = vector.shape_cast %96 : vector<1x8x256xf32> to vector<8x256xf32>
    %c7 = arith.constant 7 : index
    %c0_57 = arith.constant 0 : index
    %c0_58 = arith.constant 0 : index
    %98 = vector.load %arg3[%c7, %c0_57, %c0_58] : memref<9x8x8xf32, #tpu.memory_space<vmem>>, vector<1x8x8xf32>
    %99 = vector.shape_cast %98 : vector<1x8x8xf32> to vector<8x8xf32>
    %cst_59 = arith.constant dense<0.000000e+00> : vector<8x256xf32>
    %100 = tpu.matmul %99, %97, %cst_59 {dimension_numbers = #tpu.dot_dimension_numbers<[1], [0], [0], [1], [0, 0, 1, 1], [], []>} : vector<8x8xf32>, vector<8x256xf32>, vector<8x256xf32> -> vector<8x256xf32>
    %101 = arith.addf %95, %100 : vector<8x256xf32>
    %c0_60 = arith.constant 0 : index
    %c0_61 = arith.constant 0 : index
    %c34 = arith.constant 34 : index
    %102 = vector.load %arg2[%c0_60, %c0_61, %c34] : memref<1x8x384xf32, #tpu.memory_space<vmem>>, vector<1x8x256xf32>
    %103 = vector.shape_cast %102 : vector<1x8x256xf32> to vector<8x256xf32>
    %c-1_i32_62 = arith.constant -1 : i32
    %104 = vector.broadcast %c-1_i32_62 : i32 to vector<1x256xi32>
    %105 = arith.cmpi sge, %1, %104 : vector<1x256xi32>
    %c15_i32_63 = arith.constant 15 : i32
    %106 = vector.broadcast %c15_i32_63 : i32 to vector<1x256xi32>
    %107 = arith.cmpi slt, %1, %106 : vector<1x256xi32>
    %108 = arith.andi %105, %107 : vector<1x256xi1>
    %cst_64 = arith.constant 0.000000e+00 : f32
    %109 = vector.broadcast %cst_64 : f32 to vector<8x256xf32>
    %110 = vector.shape_cast %108 : vector<1x256xi1> to vector<1x256xi1>
    %111 = vector.broadcast %110 : vector<1x256xi1> to vector<8x256xi1>
    %112 = arith.select %111, %103, %109 : vector<8x256xi1>, vector<8x256xf32>
    %c8 = arith.constant 8 : index
    %c0_65 = arith.constant 0 : index
    %c0_66 = arith.constant 0 : index
    %113 = vector.load %arg3[%c8, %c0_65, %c0_66] : memref<9x8x8xf32, #tpu.memory_space<vmem>>, vector<1x8x8xf32>
    %114 = vector.shape_cast %113 : vector<1x8x8xf32> to vector<8x8xf32>
    %cst_67 = arith.constant dense<0.000000e+00> : vector<8x256xf32>
    %115 = tpu.matmul %114, %112, %cst_67 {dimension_numbers = #tpu.dot_dimension_numbers<[1], [0], [0], [1], [0, 0, 1, 1], [], []>} : vector<8x8xf32>, vector<8x256xf32>, vector<8x256xf32> -> vector<8x256xf32>
    %116 = arith.addf %101, %115 : vector<8x256xf32>
    %c0_68 = arith.constant 0 : index
    %c0_69 = arith.constant 0 : index
    %c0_70 = arith.constant 0 : index
    %117 = vector.load %arg4[%c0_68, %c0_69, %c0_70] : memref<1x8x256xf32, #tpu.memory_space<vmem>>, vector<1x8x256xf32>
    %118 = vector.shape_cast %117 : vector<1x8x256xf32> to vector<8x256xf32>
    %119 = vector.shape_cast %116 : vector<8x256xf32> to vector<1x8x256xf32>
    tpu.vector_store %arg4[%c0_68, %c0_69, %c0_70], %119 {strides = array<i32>} : memref<1x8x256xf32, #tpu.memory_space<vmem>>, vector<1x8x256xf32>,
    %120 = vector.broadcast %8 : vector<1x256xf32> to vector<8x256xf32>
    %121 = arith.mulf %116, %120 : vector<8x256xf32>
    %cst_71 = arith.constant dense<0.000000e+00> : vector<8xf32>
    %122 = vector.multi_reduction <add>, %121, %cst_71 [1] : vector<8x256xf32> to vector<8xf32>
    %123 = vector.shape_cast %122 : vector<8xf32> to vector<8x1xf32>
    %124 = arith.addf %2, %123 : vector<8x1xf32>
    %125 = arith.mulf %121, %121 : vector<8x256xf32>
    %cst_72 = arith.constant dense<0.000000e+00> : vector<8xf32>
    %126 = vector.multi_reduction <add>, %125, %cst_72 [1] : vector<8x256xf32> to vector<8xf32>
    %127 = vector.shape_cast %126 : vector<8xf32> to vector<8x1xf32>
    %128 = arith.addf %3, %127 : vector<8x1xf32>
    %c0_73 = arith.constant 0 : index
    %c0_74 = arith.constant 0 : index
    %c0_75 = arith.constant 0 : index
    %129 = vector.load %arg5[%c0_73, %c0_74, %c0_75] : memref<1x8x2xf32, #tpu.memory_space<vmem>>, vector<1x8x1xf32>
    %130 = vector.shape_cast %129 : vector<1x8x1xf32> to vector<8x1xf32>
    %131 = vector.shape_cast %124 : vector<8x1xf32> to vector<1x8x1xf32>
    tpu.vector_store %arg5[%c0_73, %c0_74, %c0_75], %131 {strides = array<i32>} : memref<1x8x2xf32, #tpu.memory_space<vmem>>, vector<1x8x1xf32>,
    %c0_76 = arith.constant 0 : index
    %c0_77 = arith.constant 0 : index
    %c1_78 = arith.constant 1 : index
    %132 = vector.load %arg5[%c0_76, %c0_77, %c1_78] : memref<1x8x2xf32, #tpu.memory_space<vmem>>, vector<1x8x1xf32>
    %133 = vector.shape_cast %132 : vector<1x8x1xf32> to vector<8x1xf32>
    %134 = vector.shape_cast %128 : vector<8x1xf32> to vector<1x8x1xf32>
    tpu.vector_store %arg5[%c0_76, %c0_77, %c1_78], %134 {strides = array<i32>} : memref<1x8x2xf32, #tpu.memory_space<vmem>>, vector<1x8x1xf32>,
    return
  }
  func.func @transform_0(%arg0: i32) -> (i32, i32) {
    %c0_i32 = arith.constant 0 : i32
    %c0_i32_0 = arith.constant 0 : i32
    %c0_i32_1 = arith.constant 0 : i32
    return %c0_i32, %c0_i32_0 : i32, i32
  }
  func.func @transform_1(%arg0: i32) -> (i32, i32, i32) {
    %c0_i32 = arith.constant 0 : i32
    %c0_i32_0 = arith.constant 0 : i32
    %c0_i32_1 = arith.constant 0 : i32
    return %arg0, %c0_i32, %c0_i32_0 : i32, i32, i32
  }
  func.func @transform_2(%arg0: i32) -> (i32, i32, i32) {
    %c0_i32 = arith.constant 0 : i32
    %c0_i32_0 = arith.constant 0 : i32
    %c0_i32_1 = arith.constant 0 : i32
    %c0_i32_2 = arith.constant 0 : i32
    return %c0_i32, %c0_i32_0, %c0_i32_1 : i32, i32, i32
  }
  func.func @transform_3(%arg0: i32) -> (i32, i32, i32) {
    %c0_i32 = arith.constant 0 : i32
    %c0_i32_0 = arith.constant 0 : i32
    %c0_i32_1 = arith.constant 0 : i32
    return %arg0, %c0_i32, %c0_i32_0 : i32, i32, i32
  }
  func.func @transform_4(%arg0: i32) -> (i32, i32, i32) {
    %c0_i32 = arith.constant 0 : i32
    %c0_i32_0 = arith.constant 0 : i32
    %c0_i32_1 = arith.constant 0 : i32
    return %arg0, %c0_i32, %c0_i32_0 : i32, i32, i32
  }
}

module attributes {stable_mosaic.version = 11 : i64} {
  func.func @_bn_prelu_kernel(%arg0: i32, %arg1: i32, %arg2: memref<1xf32, #tpu.memory_space<smem>>, %arg3: memref<8x1xf32, #tpu.memory_space<vmem>>, %arg4: memref<8x1xf32, #tpu.memory_space<vmem>>, %arg5: memref<1x8x256xf32, #tpu.memory_space<vmem>>, %arg6: memref<1x8x256xf32, #tpu.memory_space<vmem>>) attributes {dimension_semantics = [#tpu.dimension_semantics<parallel>, #tpu.dimension_semantics<parallel>], iteration_bounds = array<i64: 2, 1>, scalar_prefetch = 0 : i64, scratch_operands = 0 : i64, tpu.core_type = #tpu.core_type<tc>, window_params = [{transform_indices = @transform_0, window_bounds = array<i64: 1>}, {pipeline_mode = #tpu.pipeline_mode<synchronous>, transform_indices = @transform_1, window_bounds = array<i64: 8, 1>}, {pipeline_mode = #tpu.pipeline_mode<synchronous>, transform_indices = @transform_2, window_bounds = array<i64: 8, 1>}, {transform_indices = @transform_3, window_bounds = array<i64: 1, 8, 256>}, {transform_indices = @transform_4, window_bounds = array<i64: 1, 8, 256>}]} {
    %c0 = arith.constant 0 : index
    %0 = memref.load %arg2[%c0] : memref<1xf32, #tpu.memory_space<smem>>
    %c0_0 = arith.constant 0 : index
    %c0_1 = arith.constant 0 : index
    %c0_2 = arith.constant 0 : index
    %1 = vector.load %arg5[%c0_0, %c0_1, %c0_2] : memref<1x8x256xf32, #tpu.memory_space<vmem>>, vector<1x8x256xf32>
    %2 = vector.shape_cast %1 : vector<1x8x256xf32> to vector<8x256xf32>
    %c0_3 = arith.constant 0 : index
    %c0_4 = arith.constant 0 : index
    %3 = vector.load %arg3[%c0_3, %c0_4] : memref<8x1xf32, #tpu.memory_space<vmem>>, vector<8x1xf32>
    %4 = vector.broadcast %3 : vector<8x1xf32> to vector<8x256xf32>
    %5 = arith.mulf %2, %4 : vector<8x256xf32>
    %c0_5 = arith.constant 0 : index
    %c0_6 = arith.constant 0 : index
    %6 = vector.load %arg4[%c0_5, %c0_6] : memref<8x1xf32, #tpu.memory_space<vmem>>, vector<8x1xf32>
    %7 = vector.broadcast %6 : vector<8x1xf32> to vector<8x256xf32>
    %8 = arith.addf %5, %7 : vector<8x256xf32>
    %cst = arith.constant 0.000000e+00 : f32
    %9 = vector.broadcast %cst : f32 to vector<8x256xf32>
    %10 = arith.cmpf oge, %8, %9 : vector<8x256xf32>
    %11 = vector.broadcast %0 : f32 to vector<8x256xf32>
    %12 = arith.mulf %11, %8 : vector<8x256xf32>
    %13 = arith.select %10, %8, %12 : vector<8x256xi1>, vector<8x256xf32>
    %c0_7 = arith.constant 0 : index
    %c0_8 = arith.constant 0 : index
    %c0_9 = arith.constant 0 : index
    %14 = vector.load %arg6[%c0_7, %c0_8, %c0_9] : memref<1x8x256xf32, #tpu.memory_space<vmem>>, vector<1x8x256xf32>
    %15 = vector.shape_cast %14 : vector<1x8x256xf32> to vector<8x256xf32>
    %16 = vector.shape_cast %13 : vector<8x256xf32> to vector<1x8x256xf32>
    tpu.vector_store %arg6[%c0_7, %c0_8, %c0_9], %16 {strides = array<i32>} : memref<1x8x256xf32, #tpu.memory_space<vmem>>, vector<1x8x256xf32>,
    return
  }
  func.func @transform_0(%arg0: i32, %arg1: i32) -> i32 {
    %c0_i32 = arith.constant 0 : i32
    %c0_i32_0 = arith.constant 0 : i32
    return %c0_i32 : i32
  }
  func.func @transform_1(%arg0: i32, %arg1: i32) -> (i32, i32) {
    %c0_i32 = arith.constant 0 : i32
    %c0_i32_0 = arith.constant 0 : i32
    %c0_i32_1 = arith.constant 0 : i32
    return %c0_i32, %c0_i32_0 : i32, i32
  }
  func.func @transform_2(%arg0: i32, %arg1: i32) -> (i32, i32) {
    %c0_i32 = arith.constant 0 : i32
    %c0_i32_0 = arith.constant 0 : i32
    %c0_i32_1 = arith.constant 0 : i32
    return %c0_i32, %c0_i32_0 : i32, i32
  }
  func.func @transform_3(%arg0: i32, %arg1: i32) -> (i32, i32, i32) {
    %c0_i32 = arith.constant 0 : i32
    %c0_i32_0 = arith.constant 0 : i32
    return %arg0, %c0_i32, %arg1 : i32, i32, i32
  }
  func.func @transform_4(%arg0: i32, %arg1: i32) -> (i32, i32, i32) {
    %c0_i32 = arith.constant 0 : i32
    %c0_i32_0 = arith.constant 0 : i32
    return %arg0, %c0_i32, %arg1 : i32, i32, i32
  }
}

</mosaic_0001>

<bundles_post_ra>
// kernel: convolution_forward.3
= control target key start
LH: loop header
LB: loop body
LE: loop exit
PB: predicated region body
PF: predicated region fallthrough
CT: control target
= control target key end

     0   :  { %s445_s17 = smov 0   ;;  %s447_s18 = smov 0   ;;  %s484_s0 = inlined_call_operand.<no memory space> [shape: f32[1], index: 0, kind: input, shape index: {}]   ;;  %s485_s1 = inlined_call_operand.vmem [shape: f32[8,1], index: 1, kind: input, shape index: {}]   ;;  %s486_s2 = inlined_call_operand.vmem [shape: f32[8,1], index: 2, kind: input, shape index: {}]   ;;  %s487_s3 = inlined_call_operand.vmem [shape: f32[2,8,256], index: 3, kind: input, shape index: {}]   ;;  %s488_s4 = inlined_call_operand.vmem [shape: f32[2,8,256], index: 4, kind: output, shape index: {}]  }
   0x1   :  { %9 = sst [smem:[#allocation2]] %s484_s0  ;;  %s449_s19 = smov 0  }
   0x2 LB: > { %s27_s0 = sadd.s32 1, %s410_s18  ;;  %p357_p0 = scmp.ge.s32.totalorder %s414_s19, 1  ;;  %s414_s19 = sphi %s449_s19, %s15_s19   ;;  %s410_s18 = sphi %s447_s18, %s490_s18   ;;  %s406_s17 = sphi %s445_s17, %s489_s17  }
   0x3   : > { %p29_p1 = scmp.ge.s32.totalorder %s27_s0, 2  ;;  %p184_p2 = scmp.lt.s32.totalorder %s414_s19, 3 }
   0x5   : > { %s492_s0 = smov (%p29_p1, %s27_s0), 0  ;;  %p185_p3 = pnand %p357_p0, %p184_p2 }
   0x6   : > { %p219_p4 = scmp.lt.s32.totalorder (!%p185_p3), %s406_s17, 1  ;;  %s238_s25 = sld [smem:[#allocation2]] (!%p185_p3) }
   0x7   : > { %188 = sbr.rel (%p185_p3) target bundleno = 144 (0x90), region = 36 }
   0xc   : > { %v241_v0 = vld [vmem:[%s485_s1] sm:$0xff]  ;;  %v416_v1 = vmov 0   ;;  %s494_s17 = smov (!%p219_p4, %s406_s17), 1  ;;  %v259_v9 = vstv %s238_s25 }
   0xd   : > { %391 = vset.pattern.permute.xlu0 %v416_v1  ;;  %v249_v2 = vld [vmem:[%s486_s2] sm:$0xff]  ;;  %s364_s24 = sshll.u32 %s494_s17, 4 }
   0xe   : > { %244 = vperm.xlu0 %391, %v241_v0   ;;  %s226_s28 = scalar_lea.vmem %s487_s3, %s364_s24  ;;  %s236_s5 = scalar_lea.vmem %s488_s4, %s364_s24 }
   0xf   : > { %v239_v4 = vld [vmem:[%s226_s28] sm:$0xff]  ;;  %v240_v5 = vld [vmem:[%s226_s28 + $0x8] sm:$0xff] }
  0x16   : > { %252 = vperm.xlu0 %391, %v249_v2  }
  0x80   : > { %v245_v3 = vpop.permute.xlu0 %244 }
  0x81   : > { %v247_v6 = vmul.f32 %v245_v3, %v239_v4  ;;  %v248_v7 = vmul.f32 %v245_v3, %v240_v5 }
  0x88   : > { %v253_v8 = vpop.permute.xlu0 %252 }
  0x89   : > { %v255_v10 = vadd.f32 %v253_v8, %v247_v6  ;;  %v256_v11 = vadd.f32 %v253_v8, %v248_v7 }
  0x8b   : > { %vm257_vm0 = vcmp.ge.f32.partialorder %v255_v10, 0.0  ;;  %vm258_vm1 = vcmp.ge.f32.partialorder %v256_v11, 0.0  ;;  %v260_v12 = vmul.f32 %v259_v9, %v255_v10  ;;  %v261_v13 = vmul.f32 %v259_v9, %v256_v11 }
  0x8d   : > { %v262_v14 = vsel %vm257_vm0, %v255_v10, %v260_v12  ;;  %v263_v15 = vsel %vm258_vm1, %v256_v11, %v261_v13 }
  0x8e   : > { %264 = vst [vmem:[%s236_s5] sm:$0xff] %v262_v14 }
  0x8f   : > { %265 = vst [vmem:[%s236_s5 + $0x8] sm:$0xff] %v263_v15 }
  0x90 PF: > { %s15_s19 = sadd.s32 1, %s414_s19   ;;  %s489_s17 = smov %s410_s18 }
  0x91   : > { %p12_p5 = scmp.ge.s32.totalorder %s15_s19, 4   ;;  %s490_s18 = smov %s492_s0 }
  0x93   :  { %14 = sbr.rel (!%p12_p5) target bundleno = 2 (0x2), region = 66 }

// kernel: convolution_forward.2
= control target key start
LH: loop header
LB: loop body
LE: loop exit
PB: predicated region body
PF: predicated region fallthrough
CT: control target
= control target key end

     0   :  { %s996_s15 = smov 0   ;;  %s1120_s0 = inlined_call_operand.vmem [shape: s32[2,256], index: 0, kind: input, shape index: {}]   ;;  %s1121_s1 = inlined_call_operand.vmem [shape: f32[2,8,384], index: 1, kind: input, shape index: {}]   ;;  %s1122_s2 = inlined_call_operand.vmem [shape: f32[9,8,8], index: 2, kind: input, shape index: {}]   ;;  %s1123_s3 = inlined_call_operand.vmem [shape: f32[2,8,256], index: 3, kind: output, shape index: {0}]   ;;  %s1124_s4 = inlined_call_operand.vmem [shape: f32[2,8,2], index: 4, kind: output, shape index: {1}]  }
   0x1 LB: > { %s867_s16 = sadd.s32 4294967295, %s959_s15   ;;  %p871_p0 = scmp.ge.s32.totalorder %s959_s15, 1  ;;  %s959_s15 = sphi %s996_s15, %s15_s15  }
   0x2   : > { %p165_p1 = scmp.lt.s32.totalorder %s959_s15, 3 }
   0x4   : > { %p166_p2 = pnand %p871_p0, %p165_p1 }
   0x5   : > { %p195_p3 = scmp.lt.s32.totalorder (!%p166_p2), %s867_s16, 1  ;;  %s961_s21 = smov (!%p166_p2), 126  }
   0x6   : > { %169 = sbr.rel (%p166_p2) target bundleno = 435 (0x1b3), region = 32  ;;  %s962_s22 = smov (!%p166_p2), 127  }
   0x7   : > { %s963_s23 = smov (!%p166_p2), 112   ;;  %s964_s24 = smov (!%p166_p2), 111  }
   0x8   : > { %s965_s25 = smov (!%p166_p2), 110   ;;  %s966_s26 = smov (!%p166_p2), 96  }
   0x9   : > { %s967_s27 = smov (!%p166_p2), 95   ;;  %s968_s28 = smov (!%p166_p2), 94  }
   0xb   : > { %s1134_s16 = smov (!%p195_p3, %s867_s16), 1  ;;  %v876_v4 = vld [vmem:[%s1120_s0 + $0x1] ss:$2 sm:$0x3]  ;;  %v969_v5 = vmov 0   ;;  %vm247_vm5 = vcmask 64512  }
   0xc   : > { %s919_s17 = smul.u32 24, %s1134_s16  ;;  %vm217_vm0 = vcmp.ge.s32.totalorder %v876_v4, 1  ;;  %vm218_vm1 = vcmp.lt.s32.totalorder %v876_v4, 17  ;;  %v227_v11 = vld [vmem:[%s1122_s2] sm:$0xff]  ;;  %vm334_vm6 = vcmp.ge.s32.totalorder %v876_v4, 4294967295  ;;  %vm335_vm7 = vcmp.lt.s32.totalorder %v876_v4, 15 }
   0xd   : > { %vm219_vm2 = vmand %vm217_vm0, %vm218_vm1  ;;  %vm242_vm9 = vcmask 1039360   ;;  %v878_v21 = vld [vmem:[%s1122_s2 + $0x8] sm:$0xff]  ;;  %vm470_vm10 = vcmask 908288   ;;  %vm348_vm11 = vcmask 1031168   ;;  %v885_v34 = vld [vmem:[%s1122_s2 + $0x10] sm:$0xff]  ;;  %vm408_vm14 = vcmask 916480  }
   0xe   : > { %s199_s20 = scalar_lea.vmem %s1121_s1, %s919_s17  ;;  %v220_v6 = vsel %vm219_vm2, 1, %v969_v5  ;;  %vm336_vm8 = vmand %vm334_vm6, %vm335_vm7  ;;  %v890_v37 = vld [vmem:[%s1122_s2 + $0x18] sm:$0xff]  ;;  %v895_v41 = vld [vmem:[%s1122_s2 + $0x20] sm:$0xff]  ;;  %vm526_vm15 = vcmask 900096   ;;  %vm586_vm0 = vcmask 785408   ;;  %vm648_vm1 = vcmask 777216  }
   0xf   : > { %v228_v0 = vld [vmem:[%s199_s20] sm:$0xff]  ;;  %v229_v1 = vld [vmem:[%s199_s20 + $0x8] sm:$0xff]  ;;  %v230_v2 = vld [vmem:[%s199_s20 + $0x10] sm:$0xff]  ;;  %v221_v7 = vperm.slane %v220_v6, 0  ;;  %v222_v8 = vperm.slane %v220_v6, 1  ;;  %v337_v15 = vsel %vm336_vm8, 1, %v969_v5 }
  0x10   : > { %342 = vrot.lane.b32.xlu1 %v228_v0, %s961_s21  ;;  %v938_v3 = vpack.i.bf16 %v229_v1, %v228_v0  ;;  %346 = vrot.lane.b32.xlu2 %v230_v2, %s961_s21  ;;  %v338_v19 = vperm.slane %v337_v15, 0  ;;  %v339_v25 = vperm.slane %v337_v15, 1  ;;  %v898_v45 = vld [vmem:[%s1122_s2 + $0x28] sm:$0xff]  ;;  %v903_v49 = vld [vmem:[%s1122_s2 + $0x30] sm:$0xff]  ;;  %vm704_vm2 = vcmask 769024   ;;  %s875_s5 = sshll.u32 %s1134_s16, 3 }
  0x11   : > { %vm1013_vm3 = vcmp.eq.s32.totalorder %v221_v7, 1  ;;  %vm1017_vm4 = vcmp.eq.s32.totalorder %v222_v8, 1  ;;  %v908_v61 = vld [vmem:[%s1122_s2 + $0x38] sm:$0xff]  ;;  %s208_s8 = scalar_lea.vmem %s1124_s4, %s875_s5 }
  0x12   : > { %939 = vrot.lane.b32.xlu0 %v938_v3, %s962_s22  ;;  %881 = vmatpush.msk.msra.mxu2 %vm1013_vm3, %v228_v0  ;;  %vm1034_vm12 = vcmp.eq.s32.totalorder %v338_v19, 1  ;;  %vm1042_vm13 = vcmp.eq.s32.totalorder %v339_v25, 1 }
  0x13   : > { %883 = vmatpush.msk.msra.mxu3 %vm1017_vm4, %v229_v1  ;;  %882 = vmatmul.msk.f32.vlgmr.msra.gmra.mxu2 %vm247_vm5, %v227_v11 }
  0x14   : > { %884 = vmatmul.msk.f32.vlgmr.msra.gmra.mxu3 %vm247_vm5, %v227_v11 }
  0x18   : > { %344 = vrot.lane.b32.xlu1 %v229_v1, %s961_s21  ;;  %402 = vrot.lane.b32.xlu2 %v228_v0, %s963_s23 }
  0x1a   : > { %240 = vrot.lane.b32.xlu0 %v230_v2, %s962_s22 }
  0x20   : > { %406 = vrot.lane.b32.xlu1 %v230_v2, %s963_s23  ;;  %944 = vrot.lane.b32.xlu2 %v938_v3, %s964_s24 }
  0x22   : > { %404 = vrot.lane.b32.xlu0 %v229_v1, %s963_s23 }
  0x28   : > { %520 = vrot.lane.b32.xlu1 %v228_v0, %s965_s25  ;;  %522 = vrot.lane.b32.xlu2 %v229_v1, %s965_s25 }
  0x2a   : > { %468 = vrot.lane.b32.xlu0 %v230_v2, %s964_s24 }
  0x30   : > { %580 = vrot.lane.b32.xlu1 %v228_v0, %s966_s26  ;;  %582 = vrot.lane.b32.xlu2 %v229_v1, %s966_s26 }
  0x32   : > { %524 = vrot.lane.b32.xlu0 %v230_v2, %s965_s25 }
  0x38   : > { %949 = vrot.lane.b32.xlu1 %v938_v3, %s967_s27  ;;  %646 = vrot.lane.b32.xlu2 %v230_v2, %s967_s27  ;;  %s918_s27 = sshll.u32 %s1134_s16, 4 }
  0x39   : > { %s204_s30 = scalar_lea.vmem %s1123_s3, %s918_s27 }
  0x3a   : > { %584 = vrot.lane.b32.xlu0 %v230_v2, %s966_s26 }
  0x40   : > { %700 = vrot.lane.b32.xlu1 %v229_v1, %s968_s28  ;;  %702 = vrot.lane.b32.xlu2 %v230_v2, %s968_s28  ;;  %v911_v2 = vld [vmem:[%s1122_s2 + $0x40] sm:$0xff] }
  0x42   : > { %698 = vrot.lane.b32.xlu0 %v228_v0, %s968_s28 }
  0x6a   : > { %v347_v12 = vpop.permute.xlu2 %346 }
  0x72   : > { %v403_v13 = vpop.permute.xlu2 %402 }
  0x7a   : > { %v945_v20 = vpop.permute.xlu2 %944 }
  0x7b   : > { %v947_v22 = vunpack.i.h.bf16 %v945_v20  ;;  %v946_v23 = vunpack.i.l.bf16 %v945_v20 }
  0x7d   : > { %v471_v28 = vsel %vm470_vm10, %v946_v23, %v947_v22 }
  0x82   : > { %v343_v14 = vpop.permute.xlu1 %342  ;;  %v523_v38 = vpop.permute.xlu2 %522 }
  0x84   : > { %v940_v16 = vpop.permute.xlu0 %939 }
  0x85   : > { %v942_v17 = vunpack.i.h.bf16 %v940_v16  ;;  %v941_v18 = vunpack.i.l.bf16 %v940_v16 }
  0x87   : > { %v243_v24 = vsel %vm242_vm9, %v941_v18, %v942_v17 }
  0x88   : > { %266 = vmatpush.msra.mxu0 %v243_v24 }
  0x89   : > { %879 = vmatmul.msk.f32.vlgmr.msra.gmra.mxu0 %vm247_vm5, %v878_v21 }
  0x8a   : > { %v345_v27 = vpop.permute.xlu1 %344  ;;  %v583_v47 = vpop.permute.xlu2 %582 }
  0x8b   : > { %v349_v29 = vsel %vm348_vm11, %v343_v14, %v345_v27  ;;  %v350_v33 = vsel %vm348_vm11, %v345_v27, %v347_v12 }
  0x8c   : > { %v241_v30 = vpop.permute.xlu0 %240  ;;  %886 = vmatpush.msk.msrb.mxu0 %vm1034_vm12, %v349_v29  ;;  %v970_v29 = vmov 0.0  }
  0x8d   : > { %v244_v32 = vsel %vm242_vm9, %v942_v17, %v241_v30 }
  0x8e   : > { %493 = vmatpush.msra.mxu0 %v471_v28  ;;  %286 = vmatpush.msra.mxu1 %v244_v32 }
  0x8f   : > { %880 = vmatmul.msk.f32.vlgmr.msra.gmra.mxu1 %vm247_vm5, %v878_v21 }
  0x90   : > { %888 = vmatpush.msk.msrb.mxu1 %vm1042_vm13, %v350_v33 }
  0x91   : > { %887 = vmatmul.msk.f32.vlgmr.msrb.gmra.mxu0 %vm247_vm5, %v885_v34 }
  0x92   : > { %v407_v35 = vpop.permute.xlu1 %406  ;;  %v647_v53 = vpop.permute.xlu2 %646 }
  0x94   : > { %v405_v36 = vpop.permute.xlu0 %404 }
  0x95   : > { %v409_v39 = vsel %vm408_vm14, %v403_v13, %v405_v36  ;;  %v410_v40 = vsel %vm408_vm14, %v405_v36, %v407_v35 }
  0x96   : > { %891 = vmatpush.msk.msrb.mxu2 %vm1013_vm3, %v409_v39  ;;  %893 = vmatpush.msk.msrb.mxu3 %vm1017_vm4, %v410_v40  ;;  %v311_v6 = vpop.f32.mrf.mxu2 }
  0x97   : > { %892 = vmatmul.msk.f32.vlgmr.msrb.gmra.mxu2 %vm247_vm5, %v890_v37  ;;  %894 = vmatmul.msk.f32.vlgmr.msrb.gmra.mxu3 %vm247_vm5, %v890_v37  ;;  %v331_v8 = vpop.f32.mrf.mxu3 }
  0x98   : > { %889 = vmatmul.msk.f32.vlgmr.msrb.gmra.mxu1 %vm247_vm5, %v885_v34 }
  0x99   : > { %896 = vmatmul.msk.f32.vlgmr.msra.gmra.mxu0 %vm247_vm5, %v895_v41 }
  0x9a   : > { %v521_v42 = vpop.permute.xlu1 %520  ;;  %v703_v62 = vpop.permute.xlu2 %702 }
  0x9b   : > { %v527_v43 = vsel %vm526_vm15, %v521_v42, %v523_v38 }
  0x9c   : > { %v469_v44 = vpop.permute.xlu0 %468  ;;  %899 = vmatpush.msk.msra.mxu2 %vm1034_vm12, %v527_v43 }
  0x9d   : > { %v472_v46 = vsel %vm470_vm10, %v947_v22, %v469_v44  ;;  %v209_v22 = vld [vmem:[%s1120_s0] ss:$2 sm:$0x3] }
  0x9e   : > { %513 = vmatpush.msra.mxu1 %v472_v46 }
  0x9f   : > { %900 = vmatmul.msk.f32.vlgmr.msra.gmra.mxu2 %vm247_vm5, %v898_v45 }
  0xa0   : > { %897 = vmatmul.msk.f32.vlgmr.msra.gmra.mxu1 %vm247_vm5, %v895_v41 }
  0xa2   : > { %v581_v48 = vpop.permute.xlu1 %580 }
  0xa3   : > { %v587_v50 = vsel %vm586_vm0, %v581_v48, %v583_v47 }
  0xa4   : > { %v525_v51 = vpop.permute.xlu0 %524  ;;  %904 = vmatpush.msk.msrb.mxu0 %vm1013_vm3, %v587_v50  ;;  %vm212_vm3 = vcmp.lt.s32.totalorder %v209_v22, 256 }
  0xa5   : > { %v528_v52 = vsel %vm526_vm15, %v523_v38, %v525_v51  ;;  %905 = vmatmul.msk.f32.vlgmr.msrb.gmra.mxu0 %vm247_vm5, %v903_v49  ;;  %v877_v30 = vsel %vm212_vm3, 1.0, %v970_v29 }
  0xa6   : > { %901 = vmatpush.msk.msra.mxu3 %vm1042_vm13, %v528_v52  ;;  %v761_v38 = vperm.slane %v877_v30, 0  ;;  %v762_v40 = vperm.slane %v877_v30, 1 }
  0xa7   : > { %902 = vmatmul.msk.f32.vlgmr.msra.gmra.mxu3 %vm247_vm5, %v898_v45 }
  0xaa   : > { %v950_v54 = vpop.permute.xlu1 %949 }
  0xab   : > { %v952_v55 = vunpack.i.h.bf16 %v950_v54  ;;  %v951_v56 = vunpack.i.l.bf16 %v950_v54 }
  0xac   : > { %v585_v57 = vpop.permute.xlu0 %584 }
  0xad   : > { %v650_v58 = vsel %vm648_vm1, %v952_v55, %v647_v53  ;;  %v588_v59 = vsel %vm586_vm0, %v583_v47, %v585_v57  ;;  %v649_v60 = vsel %vm648_vm1, %v951_v56, %v952_v55 }
  0xae   : > { %906 = vmatpush.msk.msrb.mxu1 %vm1017_vm4, %v588_v59  ;;  %671 = vmatpush.msrb.mxu2 %v649_v60  ;;  %vm777_vm4 = vcmask 7168  }
  0xaf   : > { %691 = vmatpush.msrb.mxu3 %v650_v58  ;;  %907 = vmatmul.msk.f32.vlgmr.msrb.gmra.mxu1 %vm247_vm5, %v903_v49 }
  0xb0   : > { %909 = vmatmul.msk.f32.vlgmr.msrb.gmra.mxu2 %vm247_vm5, %v908_v61  ;;  %910 = vmatmul.msk.f32.vlgmr.msrb.gmra.mxu3 %vm247_vm5, %v908_v61 }
  0xb2   : > { %v701_v63 = vpop.permute.xlu1 %700 }
  0xb3   : > { %v706_v0 = vsel %vm704_vm2, %v701_v63, %v703_v62 }
  0xb4   : > { %v699_v1 = vpop.permute.xlu0 %698  ;;  %914 = vmatpush.msk.msra.mxu1 %vm1042_vm13, %v706_v0 }
  0xb5   : > { %v705_v3 = vsel %vm704_vm2, %v699_v1, %v701_v63 }
  0xb6   : > { %912 = vmatpush.msk.msra.mxu0 %vm1034_vm12, %v705_v3 }
  0xb7   : > { %913 = vmatmul.msk.f32.vlgmr.msra.gmra.mxu0 %vm247_vm5, %v911_v2  ;;  %915 = vmatmul.msk.f32.vlgmr.msra.gmra.mxu1 %vm247_vm5, %v911_v2  ;;  %vm779_vm5 = vcmask 15368  }
 0x106   : > { %v268_v4 = vpop.f32.mrf.mxu0 }
 0x107   : > { %v312_v11 = vadd.f32 %v311_v6, %v268_v4 }
 0x10c   : > { %v288_v5 = vpop.f32.mrf.mxu1 }
 0x10d   : > { %v332_v12 = vadd.f32 %v331_v8, %v288_v5 }
 0x10e   : > { %v377_v7 = vpop.f32.mrf.mxu0 }
 0x10f   : > { %v400_v16 = vadd.f32 %v377_v7, %v312_v11 }
 0x115   : > { %v397_v9 = vpop.f32.mrf.mxu1 }
 0x116   : > { %v495_v13 = vpop.f32.mrf.mxu0  ;;  %v401_v17 = vadd.f32 %v397_v9, %v332_v12 }
 0x11a   : > { %v437_v10 = vpop.f32.mrf.mxu2  ;;  %v457_v14 = vpop.f32.mrf.mxu3 }
 0x11b   : > { %v460_v18 = vadd.f32 %v437_v10, %v400_v16  ;;  %v461_v19 = vadd.f32 %v457_v14, %v401_v17 }
 0x11d   : > { %v515_v15 = vpop.f32.mrf.mxu1  ;;  %v518_v23 = vadd.f32 %v495_v13, %v460_v18 }
 0x11e   : > { %v519_v24 = vadd.f32 %v515_v15, %v461_v19 }
 0x122   : > { %v555_v21 = vpop.f32.mrf.mxu2  ;;  %v615_v25 = vpop.f32.mrf.mxu0 }
 0x123   : > { %v578_v27 = vadd.f32 %v555_v21, %v518_v23 }
 0x125   : > { %v638_v31 = vadd.f32 %v615_v25, %v578_v27 }
 0x12a   : > { %v575_v20 = vpop.f32.mrf.mxu3 }
 0x12b   : > { %v579_v28 = vadd.f32 %v575_v20, %v519_v24 }
 0x12c   : > { %v635_v26 = vpop.f32.mrf.mxu1 }
 0x12d   : > { %v639_v32 = vadd.f32 %v635_v26, %v579_v28 }
 0x133   : > { %v673_v33 = vpop.f32.mrf.mxu2  ;;  %v693_v34 = vpop.f32.mrf.mxu3 }
 0x134   : > { %v696_v35 = vadd.f32 %v673_v33, %v638_v31  ;;  %v697_v36 = vadd.f32 %v693_v34, %v639_v32  ;;  %v733_v37 = vpop.f32.mrf.mxu0  ;;  %v753_v39 = vpop.f32.mrf.mxu1 }
 0x136   : > { %v756_v41 = vadd.f32 %v733_v37, %v696_v35  ;;  %v757_v42 = vadd.f32 %v753_v39, %v697_v36 }
 0x138   : > { %758 = vst [vmem:[%s204_s30] sm:$0xff] %v756_v41  ;;  %v765_v43 = vmul.f32 %v761_v38, %v756_v41  ;;  %v766_v44 = vmul.f32 %v762_v40, %v757_v42 }
 0x139   : > { %759 = vst [vmem:[%s204_s30 + $0x8] sm:$0xff] %v757_v42 }
 0x13a   : > { %v767_v45 = vadd.f32 %v766_v44, %v765_v43  ;;  %v771_v46 = vmul.f32 %v765_v43, %v765_v43  ;;  %v772_v47 = vmul.f32 %v766_v44, %v766_v44 }
 0x13c   : > { %768 = vadd.xlane.f32.xlu0 %v767_v45  ;;  %v773_v48 = vadd.f32 %v772_v47, %v771_v46 }
 0x13e   : > { %774 = vadd.xlane.f32.xlu1 %v773_v48 }
 0x1af   : > { %v769_v49 = vpop.xlane.xlu0 %768 }
 0x1b0   : > { %778 = vst.msk [vmem:[%s208_s8] sm:$0xff] %vm777_vm4, %v769_v49 }
 0x1b1   : > { %v775_v50 = vpop.xlane.xlu1 %774 }
 0x1b2   : > { %780 = vst.msk [vmem:[%s208_s8] sm:$0xff] %vm779_vm5, %v775_v50 }
 0x1b3 PF: > { %s15_s15 = sadd.s32 1, %s959_s15  }
 0x1b4   : > { %p12_p4 = scmp.ge.s32.totalorder %s15_s15, 4  }
 0x1b6   :  { %14 = sbr.rel (!%p12_p4) target bundleno = 1 (0x1), region = 83 }

</bundles_post_ra>
